<compile_context>
chip_gen: v7x
topology: tpu7x:2x2x1
jax: 0.10.0
libtpu: 0.0.40
codegen_flags: <defaults>
</compile_context>

<pallas_src>
import math

import jax
import jax.numpy as jnp
from jax import lax
from jax.experimental import pallas as pl
from jax.experimental.pallas import tpu as pltpu

_A_LANES = 128  # pad the fused attention projection to full lane width


def _make_gat_kernel(alpha: float, out_features: int):
    """Returns the Pallas kernel body with LeakyReLU slope `alpha` baked in."""
    # max(s, alpha*s) == LeakyReLU(s) whenever 0 <= alpha <= 1 (one VPU op).
    use_max_lrelu = 0.0 <= alpha <= 1.0

    def gat_kernel(x_ref, w_ref, wa_ref, adj_ref, feats_ref, prob_ref):
        # h = x @ W  (bf16 x bf16 -> f32 accumulation on the MXU)   -> (N, Fout)
        h = jnp.dot(x_ref[...], w_ref[...], preferred_element_type=jnp.float32)

        # Fused attention projections, folded through W in the wrapper:
        #   Wa[:, 0] = W @ a[:Fout]   ("source" half, h_i term)
        #   Wa[:, 1] = W @ a[Fout:]   ("dest"   half, h_j term), rest zero-pad.
        # Independent of h -> overlaps with the x @ W matmul above.
        fa = jnp.dot(x_ref[...], wa_ref[...],
                     preferred_element_type=jnp.float32)           # (N, 128)
        f_src = fa[:, 0:1]                   # (N, 1) broadcasts along columns
        # Full-width transpose is trivial at N=64; for the tiled large-N
        # variant transpose only the fa[:, 0:8] slab (16x less XLU traffic).
        fa_t = jnp.transpose(fa)             # (128, N)
        f_dst = fa_t[1:2, :]                 # (1, N) broadcasts along rows

        # e[i, j] = LeakyReLU(h_i @ a[:F] + h_j @ a[F:])
        s = f_src + f_dst                                           # (N, N)
        if use_max_lrelu:
            e = jnp.maximum(s, jnp.float32(alpha) * s)
        else:
            e = jnp.where(s > 0, s, jnp.float32(alpha) * s)

        # Adjacency mask (-9e15 where no edge) + row softmax.  adj is bf16;
        # the compare stays in bf16 (no f32 upcast of the O(N^2) operand).
        e = jnp.where(adj_ref[...] > 0, e, jnp.float32(-9e15))
        e_max = jnp.max(e, axis=1, keepdims=True)
        p = jnp.exp(e - e_max)               # keep f32 exp at this size / v5e
        denom = jnp.sum(p, axis=1, keepdims=True)
        # Exact reciprocal: only (N, 1) values, keeps softmax normalization
        # tight for parity with the framework reference.
        attn = p * pl.reciprocal(denom, approx=False)

        # TODO(synk): F.dropout on attention weights (training=True) omitted —
        # eval-mode identity only.

        # h' = attention @ h — the N^2 * Fout term; bf16 operands, f32 accum.
        h_prime = jnp.dot(attn.astype(jnp.bfloat16), h.astype(jnp.bfloat16),
                          preferred_element_type=jnp.float32)      # (N, Fout)
        # ELU (exp clamped to avoid inf in the untaken branch).
        # TODO(synk): PyTorch's F.elu uses expm1; exp(x)-1 differs slightly
        # in the last ulps near 0.
        out_feats = jnp.where(
            h_prime > 0.0, h_prime, jnp.exp(jnp.minimum(h_prime, 0.0)) - 1.0)
        feats_ref[...] = out_feats

        # Probability row: sigmoid(mean over feature axis), written lane-dense
        # as (1, N).  The mean is an MXU contraction on the feature axis which
        # also performs the sublane->lane relayout for free.
        ones_row = jnp.full((1, out_features), 1.0 / out_features, jnp.float32)
        mean_row = lax.dot_general(
            ones_row, out_feats, (((1,), (1,)), ((), ())),
            preferred_element_type=jnp.float32)                    # (1, N)
        # Numerically stable sigmoid: exp(-|x|) never overflows; the approx
        # reciprocal runs on the otherwise-idle EUP slot.
        z = jnp.exp(-jnp.abs(mean_row))
        r = pl.reciprocal(1.0 + z, approx=True)
        prob_ref[...] = jnp.where(mean_row >= 0.0, r, z * r)

    return gat_kernel


def gat_forward_batched(x, adj, W, a, alpha):
    """Batched Pallas GAT forward: x (B,N,Fin), adj (B,N,N); W/a shared.

    Returns (out_feats (B,N,Fout), out_prob (B,1,sqrt(N),sqrt(N))).
    """
    B, N, Fin = x.shape
    Fout = W.shape[1]

    W_f32 = W.astype(jnp.float32)
    a_f32 = a.astype(jnp.float32)

    # Fold W into the attention projection: Wa = W @ [a_src | a_dst], lane-pad.
    wa = jnp.zeros((Fin, _A_LANES), jnp.float32)
    wa = wa.at[:, 0].set(W_f32 @ a_f32[:Fout, 0])
    wa = wa.at[:, 1].set(W_f32 @ a_f32[Fout:, 0])

    # bf16 operands for the MXU / the O(N^2) adjacency DMA.
    x_bf = x.astype(jnp.bfloat16)
    w_bf = W_f32.astype(jnp.bfloat16)
    wa_bf = wa.astype(jnp.bfloat16)
    adj_bf = adj.astype(jnp.bfloat16)

    cost = pl.CostEstimate(
        flops=int(B * (2 * N * Fin * Fout          # x @ W
                       + 2 * N * Fin * _A_LANES    # x @ Wa
                       + 2 * N * N * Fout          # attn @ h
                       + 2 * N * Fout              # mean reduction
                       + 8 * N * N)),              # elementwise attention math
        transcendentals=int(B * (N * N + N * Fout + 3 * N)),
        bytes_accessed=int(B * (2 * N * Fin + 2 * N * N        # bf16 inputs
                                + 4 * N * Fout + 4 * N)        # f32 outputs
                           + 2 * (Fin * Fout + Fin * _A_LANES)),
    )

    out_shapes = (
        jax.ShapeDtypeStruct((B, N, Fout), jnp.float32),
        jax.ShapeDtypeStruct((B, 1, N), jnp.float32),   # lane-dense prob row
    )

    feats, prob = pl.pallas_call(
        _make_gat_kernel(float(alpha), Fout),
        out_shape=out_shapes,
        grid=(B,),
        in_specs=[
            pl.BlockSpec((None, N, Fin), lambda b: (b, 0, 0)),     # x (per graph)
            pl.BlockSpec((Fin, Fout), lambda b: (0, 0)),           # W (resident)
            pl.BlockSpec((Fin, _A_LANES), lambda b: (0, 0)),       # Wa (resident)
            pl.BlockSpec((None, N, N), lambda b: (b, 0, 0)),       # adj (per graph)
        ],
        out_specs=(
            pl.BlockSpec((None, N, Fout), lambda b: (b, 0, 0)),
            pl.BlockSpec((None, 1, N), lambda b: (b, 0, 0)),
        ),
        compiler_params=pltpu.CompilerParams(
            dimension_semantics=("parallel",)),   # 2 TCs on v7x; harmless elsewhere
        cost_estimate=cost,
    )(x_bf, w_bf, wa_bf, adj_bf)

    s = int(math.sqrt(adj.shape[-1]))
    return feats, prob.reshape((B, 1, s, s))


def gat_forward(x, adj, W, a, alpha):
    """Single-graph forward matching GraphAttentionLayer.forward (eval mode)."""
    feats, prob = gat_forward_batched(x[None], adj[None], W, a, alpha)
    return feats[0], prob[0]


def gat_reference(x, adj, W, a, alpha):
    """Pure-JAX f32 reference of the PyTorch forward (eval mode)."""
    h = x.astype(jnp.float32) @ W.astype(jnp.float32)
    Fout = W.shape[1]
    f_src = h @ a[:Fout]          # (N, 1)
    f_dst = h @ a[Fout:]          # (N, 1)
    e = f_src + f_dst.T
    e = jnp.where(e > 0, e, alpha * e)
    e = jnp.where(adj > 0, e, jnp.float32(-9e15))
    attn = jax.nn.softmax(e, axis=1)
    h_prime = attn @ h
    out_feats = jnp.where(h_prime > 0, h_prime,
                          jnp.exp(jnp.minimum(h_prime, 0.0)) - 1.0)
    s = int(math.sqrt(adj.shape[-1]))
    out_prob = jax.nn.sigmoid(out_feats.mean(axis=1)).reshape((1, s, s))
    return out_feats, out_prob


def xavier_uniform(key, shape, gain):
    fan_in, fan_out = shape[0], shape[1]
    bound = gain * math.sqrt(6.0 / (fan_in + fan_out))
    return jax.random.uniform(
        key, shape, dtype=jnp.float32, minval=-bound, maxval=bound)


if __name__ == "__main__":
    # Module hyper-params (N must be a perfect square for the out_prob reshape).
    N = 64            # graph nodes -> out_prob is (1, 8, 8)
    in_features = 16
    out_features = 32
    alpha = 0.2
    dropout = 0.6     # unused at eval time
    B = 2             # graphs batched per pallas_call (grid axis, "parallel")

    key = jax.random.PRNGKey(0)
    k_x, k_adj, k_w, k_a = jax.random.split(key, 4)

    # Deterministic parameter init (matches the PyTorch __init__ shapes).
    W = xavier_uniform(k_w, (in_features, out_features), gain=1.414)
    a = xavier_uniform(k_a, (2 * out_features, 1), gain=1.414)

    # Deterministic example inputs (B independent graphs sharing W, a).
    xs = jax.random.normal(k_x, (B, N, in_features), dtype=jnp.float32)
    adjs = (jax.random.uniform(k_adj, (B, N, N)) < 0.3).astype(jnp.float32)
    adjs = adjs + jnp.eye(N, dtype=jnp.float32)[None]  # self-loops

    # Batched kernel call (grid=(B,)).
    feats, probs = gat_forward_batched(xs, adjs, W, a, alpha)
    jax.block_until_ready((feats, probs))
    assert feats.shape == (B, N, out_features)
    side = int(math.sqrt(N))
    assert probs.shape == (B, 1, side, side)

    # Single-graph API matching the PyTorch module's forward signature.
    f0, p0 = gat_forward(xs[0], adjs[0], W, a, alpha)
    jax.block_until_ready((f0, p0))
    assert f0.shape == (N, out_features) and p0.shape == (1, side, side)

    # Validate against the pure-f32 reference.  Tolerance covers the bf16
    # MXU-operand cast (f32 accumulation); the exact softmax reciprocal keeps
    # the normalization itself tight.
    ok = True
    for b in range(B):
        ref_f, ref_p = gat_reference(xs[b], adjs[b], W, a, alpha)
        ok &= bool(jnp.allclose(feats[b], ref_f, atol=5e-2, rtol=5e-2))
        ok &= bool(jnp.allclose(probs[b], ref_p, atol=2e-2, rtol=2e-2))
    ref_f0, ref_p0 = gat_reference(xs[0], adjs[0], W, a, alpha)
    ok &= bool(jnp.allclose(f0, ref_f0, atol=5e-2, rtol=5e-2))
    ok &= bool(jnp.allclose(p0, ref_p0, atol=2e-2, rtol=2e-2))
    assert ok

    print("KERNEL_OK")
</pallas_src>

<mosaic_0001>
module attributes {stable_mosaic.version = 11 : i64} {
  func.func @gat_kernel(%arg0: i32, %arg1: memref<1x64x16xbf16, #tpu.memory_space<vmem>>, %arg2: memref<16x32xbf16, #tpu.memory_space<vmem>>, %arg3: memref<16x128xbf16, #tpu.memory_space<vmem>>, %arg4: memref<1x64x64xbf16, #tpu.memory_space<vmem>>, %arg5: memref<1x64x32xf32, #tpu.memory_space<vmem>>, %arg6: memref<1x1x64xf32, #tpu.memory_space<vmem>>) attributes {dimension_semantics = [#tpu.dimension_semantics<parallel>], iteration_bounds = array<i64: 2>, scalar_prefetch = 0 : i64, scratch_operands = 0 : i64, tpu.core_type = #tpu.core_type<tc>, window_params = [{transform_indices = @transform_0, window_bounds = array<i64: 1, 64, 16>}, {pipeline_mode = #tpu.pipeline_mode<synchronous>, transform_indices = @transform_1, window_bounds = array<i64: 16, 32>}, {pipeline_mode = #tpu.pipeline_mode<synchronous>, transform_indices = @transform_2, window_bounds = array<i64: 16, 128>}, {transform_indices = @transform_3, window_bounds = array<i64: 1, 64, 64>}, {transform_indices = @transform_4, window_bounds = array<i64: 1, 64, 32>}, {transform_indices = @transform_5, window_bounds = array<i64: 1, 1, 64>}]} {
    %c0 = arith.constant 0 : index
    %c0_0 = arith.constant 0 : index
    %c0_1 = arith.constant 0 : index
    %0 = vector.load %arg1[%c0, %c0_0, %c0_1] : memref<1x64x16xbf16, #tpu.memory_space<vmem>>, vector<1x64x16xbf16>
    %1 = vector.shape_cast %0 : vector<1x64x16xbf16> to vector<64x16xbf16>
    %c0_2 = arith.constant 0 : index
    %c0_3 = arith.constant 0 : index
    %2 = vector.load %arg2[%c0_2, %c0_3] : memref<16x32xbf16, #tpu.memory_space<vmem>>, vector<16x32xbf16>
    %cst = arith.constant dense<0.000000e+00> : vector<64x32xf32>
    %3 = tpu.matmul %1, %2, %cst {dimension_numbers = #tpu.dot_dimension_numbers<[1], [0], [0], [1], [0, 0, 1, 1], [], []>} : vector<64x16xbf16>, vector<16x32xbf16>, vector<64x32xf32> -> vector<64x32xf32>
    %c0_4 = arith.constant 0 : index
    %c0_5 = arith.constant 0 : index
    %c0_6 = arith.constant 0 : index
    %4 = vector.load %arg1[%c0_4, %c0_5, %c0_6] : memref<1x64x16xbf16, #tpu.memory_space<vmem>>, vector<1x64x16xbf16>
    %5 = vector.shape_cast %4 : vector<1x64x16xbf16> to vector<64x16xbf16>
    %c0_7 = arith.constant 0 : index
    %c0_8 = arith.constant 0 : index
    %6 = vector.load %arg3[%c0_7, %c0_8] : memref<16x128xbf16, #tpu.memory_space<vmem>>, vector<16x128xbf16>
    %cst_9 = arith.constant dense<0.000000e+00> : vector<64x128xf32>
    %7 = tpu.matmul %5, %6, %cst_9 {dimension_numbers = #tpu.dot_dimension_numbers<[1], [0], [0], [1], [0, 0, 1, 1], [], []>} : vector<64x16xbf16>, vector<16x128xbf16>, vector<64x128xf32> -> vector<64x128xf32>
    %8 = vector.extract_strided_slice %7 {offsets = [0, 0], sizes = [64, 1], strides = [1, 1]} : vector<64x128xf32> to vector<64x1xf32>
    %9 = tpu.transpose %7, [1, 0] : vector<64x128xf32> -> vector<128x64xf32>
    %10 = vector.extract_strided_slice %9 {offsets = [1, 0], sizes = [1, 64], strides = [1, 1]} : vector<128x64xf32> to vector<1x64xf32>
    %11 = vector.broadcast %8 : vector<64x1xf32> to vector<64x64xf32>
    %12 = vector.broadcast %10 : vector<1x64xf32> to vector<64x64xf32>
    %13 = arith.addf %11, %12 : vector<64x64xf32>
    %cst_10 = arith.constant 2.000000e-01 : f32
    %14 = vector.broadcast %cst_10 : f32 to vector<64x64xf32>
    %15 = arith.mulf %14, %13 : vector<64x64xf32>
    %16 = arith.maximumf %13, %15 : vector<64x64xf32>
    %c0_11 = arith.constant 0 : index
    %c0_12 = arith.constant 0 : index
    %c0_13 = arith.constant 0 : index
    %17 = vector.load %arg4[%c0_11, %c0_12, %c0_13] : memref<1x64x64xbf16, #tpu.memory_space<vmem>>, vector<1x64x64xbf16>
    %18 = vector.shape_cast %17 : vector<1x64x64xbf16> to vector<64x64xbf16>
    %cst_14 = arith.constant 0.000000e+00 : bf16
    %19 = vector.broadcast %cst_14 : bf16 to vector<64x64xbf16>
    %20 = arith.cmpf ogt, %18, %19 : vector<64x64xbf16>
    %cst_15 = arith.constant -9.000000e+15 : f32
    %21 = vector.broadcast %cst_15 : f32 to vector<64x64xf32>
    %22 = arith.select %20, %16, %21 : vector<64x64xi1>, vector<64x64xf32>
    %cst_16 = arith.constant dense<0xFF800000> : vector<64xf32>
    %23 = vector.multi_reduction <maximumf>, %22, %cst_16 [1] : vector<64x64xf32> to vector<64xf32>
    %24 = vector.shape_cast %23 : vector<64xf32> to vector<64x1xf32>
    %25 = vector.broadcast %24 : vector<64x1xf32> to vector<64x64xf32>
    %26 = arith.subf %22, %25 : vector<64x64xf32>
    %27 = math.exp %26 : vector<64x64xf32>
    %cst_17 = arith.constant dense<0.000000e+00> : vector<64xf32>
    %28 = vector.multi_reduction <add>, %27, %cst_17 [1] : vector<64x64xf32> to vector<64xf32>
    %29 = vector.shape_cast %28 : vector<64xf32> to vector<64x1xf32>
    %30 = tpu.reciprocal %29 : vector<64x1xf32> -> vector<64x1xf32>
    %31 = vector.broadcast %30 : vector<64x1xf32> to vector<64x64xf32>
    %32 = arith.mulf %27, %31 : vector<64x64xf32>
    %33 = arith.truncf %32 : vector<64x64xf32> to vector<64x64xbf16>
    %34 = arith.truncf %3 : vector<64x32xf32> to vector<64x32xbf16>
    %cst_18 = arith.constant dense<0.000000e+00> : vector<64x32xf32>
    %35 = tpu.matmul %33, %34, %cst_18 {dimension_numbers = #tpu.dot_dimension_numbers<[1], [0], [0], [1], [0, 0, 1, 1], [], []>} : vector<64x64xbf16>, vector<64x32xbf16>, vector<64x32xf32> -> vector<64x32xf32>
    %cst_19 = arith.constant 0.000000e+00 : f32
    %36 = vector.broadcast %cst_19 : f32 to vector<64x32xf32>
    %37 = arith.cmpf ogt, %35, %36 : vector<64x32xf32>
    %cst_20 = arith.constant 0.000000e+00 : f32
    %38 = vector.broadcast %cst_20 : f32 to vector<64x32xf32>
    %39 = arith.minimumf %35, %38 : vector<64x32xf32>
    %40 = math.exp %39 : vector<64x32xf32>
    %cst_21 = arith.constant 1.000000e+00 : f32
    %41 = vector.broadcast %cst_21 : f32 to vector<64x32xf32>
    %42 = arith.subf %40, %41 : vector<64x32xf32>
    %43 = arith.select %37, %35, %42 : vector<64x32xi1>, vector<64x32xf32>
    %c0_22 = arith.constant 0 : index
    %c0_23 = arith.constant 0 : index
    %c0_24 = arith.constant 0 : index
    %44 = vector.load %arg5[%c0_22, %c0_23, %c0_24] : memref<1x64x32xf32, #tpu.memory_space<vmem>>, vector<1x64x32xf32>
    %45 = vector.shape_cast %44 : vector<1x64x32xf32> to vector<64x32xf32>
    %46 = vector.shape_cast %43 : vector<64x32xf32> to vector<1x64x32xf32>
    tpu.vector_store %arg5[%c0_22, %c0_23, %c0_24], %46 {strides = array<i32>} : memref<1x64x32xf32, #tpu.memory_space<vmem>>, vector<1x64x32xf32>,
    %cst_25 = arith.constant 3.125000e-02 : f32
    %47 = vector.broadcast %cst_25 : f32 to vector<1x32xf32>
    %cst_26 = arith.constant dense<0.000000e+00> : vector<1x64xf32>
    %48 = tpu.matmul %47, %43, %cst_26 {dimension_numbers = #tpu.dot_dimension_numbers<[1], [1], [0], [0], [0, 0, 1, 0], [], []>} : vector<1x32xf32>, vector<64x32xf32>, vector<1x64xf32> -> vector<1x64xf32>
    %49 = math.absf %48 : vector<1x64xf32>
    %cst_27 = arith.constant 0.000000e+00 : f32
    %50 = vector.broadcast %cst_27 : f32 to vector<1x64xf32>
    %51 = arith.subf %50, %49 : vector<1x64xf32>
    %52 = math.exp %51 : vector<1x64xf32>
    %cst_28 = arith.constant 1.000000e+00 : f32
    %53 = vector.broadcast %cst_28 : f32 to vector<1x64xf32>
    %54 = arith.addf %53, %52 : vector<1x64xf32>
    %55 = tpu.reciprocal %54 {approx = true} : vector<1x64xf32> -> vector<1x64xf32>
    %cst_29 = arith.constant 0.000000e+00 : f32
    %56 = vector.broadcast %cst_29 : f32 to vector<1x64xf32>
    %57 = arith.cmpf oge, %48, %56 : vector<1x64xf32>
    %58 = arith.mulf %52, %55 : vector<1x64xf32>
    %59 = arith.select %57, %55, %58 : vector<1x64xi1>, vector<1x64xf32>
    %c0_30 = arith.constant 0 : index
    %c0_31 = arith.constant 0 : index
    %c0_32 = arith.constant 0 : index
    %60 = vector.load %arg6[%c0_30, %c0_31, %c0_32] : memref<1x1x64xf32, #tpu.memory_space<vmem>>, vector<1x1x64xf32>
    %61 = vector.shape_cast %60 : vector<1x1x64xf32> to vector<1x64xf32>
    %62 = vector.shape_cast %59 : vector<1x64xf32> to vector<1x1x64xf32>
    tpu.vector_store %arg6[%c0_30, %c0_31, %c0_32], %62 {strides = array<i32>} : memref<1x1x64xf32, #tpu.memory_space<vmem>>, vector<1x1x64xf32>,
    return
  }
  func.func @transform_0(%arg0: i32) -> (i32, i32, i32) {
    %c0_i32 = arith.constant 0 : i32
    %c0_i32_0 = arith.constant 0 : i32
    %c0_i32_1 = arith.constant 0 : i32
    return %arg0, %c0_i32, %c0_i32_0 : i32, i32, i32
  }
  func.func @transform_1(%arg0: i32) -> (i32, i32) {
    %c0_i32 = arith.constant 0 : i32
    %c0_i32_0 = arith.constant 0 : i32
    %c0_i32_1 = arith.constant 0 : i32
    return %c0_i32, %c0_i32_0 : i32, i32
  }
  func.func @transform_2(%arg0: i32) -> (i32, i32) {
    %c0_i32 = arith.constant 0 : i32
    %c0_i32_0 = arith.constant 0 : i32
    %c0_i32_1 = arith.constant 0 : i32
    return %c0_i32, %c0_i32_0 : i32, i32
  }
  func.func @transform_3(%arg0: i32) -> (i32, i32, i32) {
    %c0_i32 = arith.constant 0 : i32
    %c0_i32_0 = arith.constant 0 : i32
    %c0_i32_1 = arith.constant 0 : i32
    return %arg0, %c0_i32, %c0_i32_0 : i32, i32, i32
  }
  func.func @transform_4(%arg0: i32) -> (i32, i32, i32) {
    %c0_i32 = arith.constant 0 : i32
    %c0_i32_0 = arith.constant 0 : i32
    %c0_i32_1 = arith.constant 0 : i32
    return %arg0, %c0_i32, %c0_i32_0 : i32, i32, i32
  }
  func.func @transform_5(%arg0: i32) -> (i32, i32, i32) {
    %c0_i32 = arith.constant 0 : i32
    %c0_i32_0 = arith.constant 0 : i32
    %c0_i32_1 = arith.constant 0 : i32
    return %arg0, %c0_i32, %c0_i32_0 : i32, i32, i32
  }
}

</mosaic_0001>

<bundles_post_ra>
// kernel: tpu_custom_call.1
= control target key start
LH: loop header
LB: loop body
LE: loop exit
PB: predicated region body
PF: predicated region fallthrough
CT: control target
= control target key end

     0   :  { %11 = vsyncpa [#allocation3], 0  ;;  %s1631_s0 = inlined_call_operand.vmem [shape: bf16[2,64,16], index: 0, kind: input, shape index: {}]   ;;  %s1632_s1 = inlined_call_operand.vmem [shape: bf16[16,32], index: 1, kind: input, shape index: {}]   ;;  %s1633_s2 = inlined_call_operand.vmem [shape: bf16[16,128], index: 2, kind: input, shape index: {}]   ;;  %s1634_s3 = inlined_call_operand.vmem [shape: bf16[2,64,64], index: 3, kind: input, shape index: {}]   ;;  %s1635_s4 = inlined_call_operand.vmem [shape: f32[2,64,32], index: 4, kind: output, shape index: {0}]   ;;  %s1636_s5 = inlined_call_operand.hbm [shape: f32[2,1,64], index: 5, kind: output, shape index: {1}]  }
   0x1   :  { %13 = vsyncpa [#allocation3 + $0x1], 0  ;;  %s1398_s18 = smov 0   ;;  %s1400_s19 = smov 0  }
   0x2   :  { %s1402_s20 = smov 0   ;;  %s1404_s21 = smov 0  }
   0x3 LB: > { %s1419_s22 = sadd.s32 4294967295, %s1360_s21   ;;  %s1045_s23 = sadd.s32 4294967294, %s1360_s21   ;;  %s1360_s21 = sphi %s1404_s21, %s1644_s21   ;;  %s1356_s20 = sphi %s1402_s20, %s1643_s20   ;;  %s1352_s19 = sphi %s1400_s19, %s1642_s19   ;;  %s1348_s18 = sphi %s1398_s18, %s1641_s18  }
   0x4   : > { %s1423_s24 = sadd.s32 1, %s1360_s21   ;;  %s146_s25 = sadd.s32 1, %s1356_s20 }
   0x5   : > { %s143_s26 = ssub.s32 %s1360_s21, %s1423_s24  ;;  %p156_p0 = scmp.ne.s32.totalorder %s1356_s20, %s1352_s19 }
   0x6   : > { %p144_p1 = scmp.eq.s32.totalorder %s143_s26, 0  ;;  %p157_p2 = scmp.eq.s32.totalorder %s1419_s22, 1 }
   0x7   : > { %p162_p3 = scmp.ne.s32.totalorder %s1352_s19, %s1348_s18  ;;  %p163_p4 = scmp.eq.s32.totalorder %s1045_s23, 1 }
   0x8   : > { %s1434_s27 = scalar_select %p144_p1, %s1356_s20, %s146_s25  }
   0x9   : > { %p1436_p5 = por %p157_p2, %p156_p0  ;;  %p1440_p6 = por %p163_p4, %p162_p3 }
   0xa   : > { %p1048_p7 = scmp.ge.s32.totalorder %s1360_s21, 1  ;;  %p203_p8 = scmp.lt.s32.totalorder %s1360_s21, 3 }
   0xc   : > { %p204_p9 = pnand %p1048_p7, %p203_p8 }
   0xd   : > { %v1240_v0 = vld [vmem:[%s1633_s2] sm:$0xff] (!%p204_p9)   ;;  %p240_p10 = scmp.lt.s32.totalorder (!%p204_p9), %s1419_s22, 1  ;;  %v1362_v1 = vmov (!%p204_p9), 0   ;;  %vm294_vm0 = vcmask (!%p204_p9), 130048   ;;  %v517_v18 = vlaneseq (!%p204_p9)  ;;  %vm593_vm7 = vcmask (!%p204_p9), 523264   ;;  %s238_s30 = sand.u32 (!%p204_p9), 1, %s1352_s19  }
   0xe   : > { %207 = sbr.rel (%p204_p9) target bundleno = 1281 (0x501), region = 36  ;;  %1133 = vmatprep.subr.bf16.mxu1 (!%p204_p9), %v1240_v0  ;;  %1238 = vset.pattern.permute.xlu1 (!%p204_p9), %v1362_v1  ;;  %v1245_v14 = vld [vmem:[%s1632_s1] sm:$0xff] (!%p204_p9)   ;;  %s1090_s6 = sshll.u32 (!%p204_p9), %s1419_s22, 4 }
   0xf   : > { %1134 = vmatpush3.bf16.msra.mxu1 (!%p204_p9), %v1240_v0  ;;  %1239 = vset.pattern.permute.xlu0 (!%p204_p9), %v1362_v1  ;;  %v518_v21 = vshrl.u32 (!%p204_p9), %v517_v18, 7  ;;  %s938_s12 = scalar_lea.sflag (!%p204_p9), [#allocation3], %s238_s30  ;;  %s1367_s13 = smov (!%p204_p9), [#allocation2]  }
  0x10   : > { %1123 = vmatprep.subr.bf16.mxu0 (!%p204_p9), %v1245_v14  ;;  %s1302_s14 = sshll.u32 (!%p204_p9), %s1367_s13, 4  ;;  %s1303_s14 = int_to_ptr.vmem [resolvable:$false] %s1302_s14 }
  0x11   : > { %1124 = vmatpush3.bf16.msra.mxu0 (!%p204_p9), %v1245_v14  ;;  %v519_v27 = vsub.s32 (!%p204_p9), 1, %v518_v21  ;;  %s1304_s15 = scalar_lea.vmem (!%p204_p9), %s1303_s14, 32 }
  0x15   : > { %s1451_s7 = scalar_select %p240_p10, %s1419_s22, 1 }
  0x17   : > { %s1093_s8 = sshll.u32 %s1451_s7, 5  ;;  %s1095_s17 = sshll.u32 %s1451_s7, 6 }
  0x18   : > { %s244_s11 = scalar_lea.vmem %s1631_s0, %s1093_s8  ;;  %s1479_s16 = scalar_lea.vmem %s1634_s3, %s1093_s8 }
  0x19   : > { %v1241_v2 = vld [vmem:[%s244_s11] sm:$0xff]   ;;  %v1242_v3 = vld [vmem:[%s244_s11 + $0x8] sm:$0xff]   ;;  %v1243_v4 = vld [vmem:[%s244_s11 + $0x10] sm:$0xff]   ;;  %s1548_s26 = scalar_lea.vmem %s1635_s4, %s1095_s17  ;;  %s239_s7 = scalar_lea.vmem [#allocation2], %s238_s30 }
  0x1a   : > { %1135 = vmatprep.mubr.msk.bf16.mxu1 %vm294_vm0, %v1241_v2  ;;  %1125 = vmatprep.mubr.msk.bf16.mxu0 %vm294_vm0, %v1241_v2  ;;  %v1244_v5 = vld [vmem:[%s244_s11 + $0x18] sm:$0xff]   ;;  %v547_v22 = vld [vmem:[%s1479_s16 + $0x8] sm:$0xf]  ;;  %v545_v24 = vld [vmem:[%s1479_s16] sm:$0xf]  ;;  %s953_s8 = sshll.u32 %s239_s7, 4  ;;  %s1589_s11 = scalar_lea.hbm %s1636_s5, %s1090_s6  ;;  %s1591_s8 = int_to_ptr.vmem [resolvable:$true] %s953_s8 }
  0x1b   : > { %1136 = vmatmul.mubr.msk.bf16.vlgmr.msra.gmra.mrb[0].mxu1 %vm294_vm0, %v1242_v3  ;;  %1126 = vmatmul.mubr.msk.bf16.vlgmr.msra.gmra.mrb[0].mxu0 %vm294_vm0, %v1242_v3  ;;  %v552_v23 = vld [vmem:[%s1479_s16 + $0x1c] sm:$0xf]  ;;  %vm555_vm1 = vcmp.gt.bf16.partialorder %v547_v22, 0  ;;  %vm553_vm3 = vcmp.gt.bf16.partialorder %v545_v24, 0  ;;  %v546_v28 = vld [vmem:[%s1479_s16 + $0x4] sm:$0xf]  ;;  %p1305_p0 = scmp.lt.s32.totalorder %s1591_s8, %s1303_s14 }
  0x1c   : > { %1139 = vmatprep.mubr.msk.bf16.mxu1 %vm294_vm0, %v1243_v4  ;;  %1129 = vmatprep.mubr.msk.bf16.mxu0 %vm294_vm0, %v1243_v4  ;;  %vm560_vm2 = vcmp.gt.bf16.partialorder %v552_v23, 0  ;;  %v563_v29 = vsel %vm555_vm1, 65537, %v1362_v1  ;;  %v561_v33 = vsel %vm553_vm3, 65537, %v1362_v1  ;;  %vm554_vm4 = vcmp.gt.bf16.partialorder %v546_v28, 0  ;;  %v548_v34 = vld [vmem:[%s1479_s16 + $0xc] sm:$0xf] }
  0x1d   : > { %v568_v30 = vsel %vm560_vm2, 65537, %v1362_v1  ;;  %v571_v36 = vunpack.c.l.b16 %v563_v29  ;;  %v569_v42 = vunpack.c.l.b16 %v561_v33  ;;  %v562_v43 = vsel %vm554_vm4, 65537, %v1362_v1  ;;  %v549_v52 = vld [vmem:[%s1479_s16 + $0x10] sm:$0xf]  ;;  %v550_v63 = vld [vmem:[%s1479_s16 + $0x14] sm:$0xf] }
  0x1e   : > { %v576_v37 = vunpack.c.l.b16 %v568_v30  ;;  %vm556_vm5 = vcmp.gt.bf16.partialorder %v548_v34, 0  ;;  %v570_v53 = vunpack.c.l.b16 %v562_v43  ;;  %vm557_vm10 = vcmp.gt.bf16.partialorder %v549_v52, 0  ;;  %s1298_s22 = scalar_lea.vmem %s1591_s8, 16 }
  0x1f   : > { %vm579_vm6 = vcmp.ne.s32.totalorder %v571_v36, 0  ;;  %vm577_vm9 = vcmp.ne.s32.totalorder %v569_v42, 0  ;;  %v564_v56 = vsel %vm556_vm5, 65537, %v1362_v1  ;;  %v565_v2 = vsel %vm557_vm10, 65537, %v1362_v1  ;;  %p1299_p11 = scmp.ne.s32.totalorder %s1591_s8, %s1298_s22  ;;  %p1306_p1 = scmp.lt.s32.totalorder %s1304_s15, %s1298_s22 }
  0x20   : > { %vm584_vm8 = vcmp.ne.s32.totalorder %v576_v37, 0  ;;  %vm578_vm11 = vcmp.ne.s32.totalorder %v570_v53, 0  ;;  %v572_v0 = vunpack.c.l.b16 %v564_v56  ;;  %vm558_vm12 = vcmp.gt.bf16.partialorder %v550_v63, 0 }
  0x21   : > { %vm1364_vm2 = vmmov 0   ;;  %vm815_vm3 = vcmask 261120   ;;  %p1300_p12 = pnand %p1299_p11, %p1436_p5  ;;  %p1307_p2 = por %p1306_p1, %p1305_p0 }
  0x22   : > { %vm580_vm13 = vcmp.ne.s32.totalorder %v572_v0, 0 }
  0x23   : > { %1140 = vmatmul.mubr.msk.bf16.gmra.mrb[4].mxu1 %vm294_vm0, %v1244_v5  ;;  %1130 = vmatmul.mubr.msk.bf16.gmra.mrb[4].mxu0 %vm294_vm0, %v1244_v5  ;;  %p1301_p13 = pneg %p1300_p12 }
  0x25   : > { %p1308_p3 = pnand %p1307_p2, %p1301_p13 }
  0xee   : > { %v1137_v6 = vpop.f32.mrb[0].mxu1  ;;  %v1127_v63 = vpop.f32.mrb[0].mxu0 }
  0xef   : > { %489 = vperm.xlu1 %1238, %v1137_v6   ;;  %v414_v7 = vpop.f32.mrb[1].mxu1 }
  0xf0   : > { %479 = vperm.xlu0 %1239, %v414_v7   ;;  %v1138_v8 = vpop.f32.mrb[2].mxu1 }
  0xf1   : > { %v417_v9 = vpop.f32.mrb[3].mxu1 }
  0xf3   : > { %494 = vperm.xlu1 %1238, %v1138_v8  }
  0xf4   : > { %484 = vperm.xlu0 %1239, %v417_v9  }
  0xf6   : > { %v1141_v10 = vpop.f32.mrb[4].mxu1 }
  0xf7   : > { %v430_v11 = vpop.f32.mrb[5].mxu1 }
  0xf8   : > { %509 = vperm.xlu0 %1239, %v1141_v10   ;;  %v1142_v12 = vpop.f32.mrb[6].mxu1 }
  0xf9   : > { %v433_v13 = vpop.f32.mrb[7].mxu1 }
  0xfa   : > { %504 = vperm.xlu1 %1238, %v433_v13  }
  0xfc   : > { %499 = vperm.xlu0 %1239, %v430_v11  }
  0xfe   : > { %514 = vperm.xlu1 %1238, %v1142_v12  }
 0x11a   : > { %445 = vxpose.xlu0.b32.start [1/8] (short) (narrow) %v414_v7, 8 }
 0x11e   : > { %446 = vxpose.xlu0.b32.cont [2/8] (short) (narrow) %v417_v9, 8  ;;  %v573_v9 = vunpack.c.l.b16 %v565_v2  ;;  %v341_v2 = vpop.f32.mrb[1].mxu0 }
 0x120   : > { %vm581_vm15 = vcmp.ne.s32.totalorder %v573_v9, 0 }
 0x122   : > { %447 = vxpose.xlu0.b32.cont [3/8] (short) (narrow) %v1137_v6, 8 }
 0x126   : > { %448 = vxpose.xlu0.b32.cont [4/8] (short) (narrow) %v1138_v8, 8  ;;  %v551_v8 = vld [vmem:[%s1479_s16 + $0x18] sm:$0xf] }
 0x127   : > { %vm559_vm14 = vcmp.gt.bf16.partialorder %v551_v8, 0 }
 0x12a   : > { %449 = vxpose.xlu0.b32.cont [5/8] (short) (narrow) %v430_v11, 8 }
 0x12e   : > { %450 = vxpose.xlu0.b32.cont [6/8] (short) (narrow) %v433_v13, 8 }
 0x132   : > { %451 = vxpose.xlu0.b32.cont [7/8] (short) (narrow) %v1141_v10, 8  ;;  %v566_v10 = vsel %vm558_vm12, 65537, %v1362_v1 }
 0x136   : > { %452 = vxpose.xlu0.b32.end [8/8] (short) (narrow) %v1142_v12, 8 }
 0x16e   : > { %v490_v17 = vpop.permute.xlu1 %489 }
 0x16f   : > { %v480_v15 = vpop.permute.xlu0 %479 }
 0x172   : > { %v495_v20 = vpop.permute.xlu1 %494 }
 0x173   : > { %v485_v16 = vpop.permute.xlu0 %484 }
 0x177   : > { %v1472_v19 = vpop.permute.xlu0 %509 }
 0x179   : > { %v505_v25 = vpop.permute.xlu1 %504 }
 0x17b   : > { %v500_v26 = vpop.permute.xlu0 %499 }
 0x17d   : > { %v515_v35 = vpop.permute.xlu1 %514 }
 0x19a   : > { %v461_v31 = vpop.trf.xlu0 }
 0x19b   : > { %v520_v32 = vrot.slane %v461_v31, %v519_v27 }
 0x19d   : > { %v523_v38 = vadd.f32 %v520_v32, %v490_v17  ;;  %v528_v39 = vadd.f32 %v520_v32, %v515_v35  ;;  %v521_v40 = vadd.f32 %v520_v32, %v480_v15  ;;  %v522_v41 = vadd.f32 %v520_v32, %v485_v16 }
 0x19e   : > { %v524_v47 = vadd.f32 %v520_v32, %v495_v20  ;;  %v525_v62 = vadd.f32 %v520_v32, %v500_v26  ;;  %v526_v7 = vadd.f32 %v520_v32, %v505_v25  ;;  %v527_v15 = vadd.f32 %v520_v32, %v1472_v19 }
 0x19f   : > { %v531_v44 = vmul.f32 0.2, %v523_v38  ;;  %v536_v45 = vmul.f32 0.2, %v528_v39  ;;  %v529_v46 = vmul.f32 0.2, %v521_v40  ;;  %v574_v16 = vunpack.c.l.b16 %v566_v10 }
 0x1a0   : > { %v530_v51 = vmul.f32 0.2, %v522_v41  ;;  %v532_v61 = vmul.f32 0.2, %v524_v47  ;;  %v533_v6 = vmul.f32 0.2, %v525_v62 }
 0x1a1   : > { %v539_v48 = vmax.f32 %v523_v38, %v531_v44  ;;  %v544_v49 = vmax.f32 %v528_v39, %v536_v45  ;;  %v537_v50 = vmax.f32 %v521_v40, %v529_v46  ;;  %v534_v14 = vmul.f32 0.2, %v526_v7 }
 0x1a2   : > { %v538_v60 = vmax.f32 %v522_v41, %v530_v51  ;;  %v540_v5 = vmax.f32 %v524_v47, %v532_v61  ;;  %v541_v13 = vmax.f32 %v525_v62, %v533_v6  ;;  %v567_v17 = vsel %vm559_vm14, 65537, %v1362_v1 }
 0x1a3   : > { %v587_v54 = vsel %vm579_vm6, %v539_v48, -9e+15  ;;  %v1491_v55 = vsel %vm584_vm8, %v544_v49, -9e+15  ;;  %v585_v59 = vsel %vm577_vm9, %v537_v50, -9e+15  ;;  %v542_v21 = vmax.f32 %v526_v7, %v534_v14  ;;  %vm1558_vm8 = vmpackc.low %vm815_vm3, %vm815_vm3 }
 0x1a4   : > { %v600_v57 = vsel %vm593_vm7, %v587_v54, -inf  ;;  %v615_v58 = vsel %vm593_vm7, %v1491_v55, -inf  ;;  %v594_v3 = vsel %vm593_vm7, %v585_v59, -inf  ;;  %v586_v4 = vsel %vm578_vm11, %v538_v60, -9e+15 }
 0x1a5   : > { %601 = vmax.xlane.f32.xlu1 %v600_v57  ;;  %616 = vmax.xlane.f32.xlu0 %v615_v58  ;;  %v597_v11 = vsel %vm593_vm7, %v586_v4, -inf  ;;  %v588_v12 = vsel %vm580_vm13, %v540_v5, -9e+15  ;;  %v589_v20 = vsel %vm581_vm15, %v541_v13, -9e+15  ;;  %vm582_vm0 = vcmp.ne.s32.totalorder %v574_v16, 0 }
 0x1a6   : > { %v603_v18 = vsel %vm593_vm7, %v588_v12, -inf  ;;  %v535_v22 = vmul.f32 0.2, %v527_v15  ;;  %v575_v23 = vunpack.c.l.b16 %v567_v17  ;;  %v606_v24 = vsel %vm593_vm7, %v589_v20, -inf }
 0x1a7   : > { %v590_v25 = vsel %vm582_vm0, %v542_v21, -9e+15  ;;  %vm930_vm13 = vcmask 516096  }
 0x1a8   : > { %v543_v26 = vmax.f32 %v527_v15, %v535_v22  ;;  %vm583_vm1 = vcmp.ne.s32.totalorder %v575_v23, 0  ;;  %v609_v19 = vsel %vm593_vm7, %v590_v25, -inf }
 0x1a9   : > { %595 = vmax.xlane.f32.xlu1 %v594_v3  ;;  %v1128_v3 = vpop.f32.mrb[2].mxu0 }
 0x1aa   : > { %v591_v27 = vsel %vm583_vm1, %v543_v26, -9e+15  ;;  %v344_v5 = vpop.f32.mrb[3].mxu0 }
 0x1ab   : > { %v612_v1 = vsel %vm593_vm7, %v591_v27, -inf  ;;  %v1131_v9 = vpop.f32.mrb[4].mxu0 }
 0x1ad   : > { %598 = vmax.xlane.f32.xlu1 %v597_v11  ;;  %v357_v11 = vpop.f32.mrb[5].mxu0 }
 0x1b1   : > { %604 = vmax.xlane.f32.xlu1 %v603_v18 }
 0x1b5   : > { %607 = vmax.xlane.f32.xlu1 %v606_v24 }
 0x1b9   : > { %610 = vmax.xlane.f32.xlu1 %v609_v19 }
 0x1bd   : > { %613 = vmax.xlane.f32.xlu1 %v612_v1 }
 0x232   : > { %v602_v28 = vpop.xlane.xlu1 %601  ;;  %v617_v56 = vpop.xlane.xlu0 %616 }
 0x233   : > { %v620_v29 = vsub.f32 %v587_v54, %v602_v28  ;;  %v625_v58 = vsub.f32 %v1491_v55, %v617_v56  ;;  %v686_v55 = vpack.c.bf16 %v344_v5, %v341_v2 }
 0x235   : > { %v630_v30 = vmul.f32 1.442695, %v620_v29  ;;  %v640_v60 = vmul.f32 1.442695, %v625_v58  ;;  %1143 = vmatprep.subr.bf16.mxu0 %v686_v55 }
 0x236   : > { %v596_v31 = vpop.xlane.xlu1 %595  ;;  %1144 = vmatpush3.bf16.msra.mxu0 %v686_v55 }
 0x237   : > { %v618_v32 = vsub.f32 %v585_v59, %v596_v31  ;;  %1246 = vpow2.f32 %v630_v30 }
 0x239   : > { %v626_v33 = vmul.f32 1.442695, %v618_v32 }
 0x23a   : > { %v599_v34 = vpop.xlane.xlu1 %598 }
 0x23b   : > { %1248 = vpow2.f32 %v626_v33  ;;  %v619_v35 = vsub.f32 %v586_v4, %v599_v34  ;;  %v687_v4 = vpack.c.bf16 %v1128_v3, %v1127_v63 }
 0x23d   : > { %v628_v36 = vmul.f32 1.442695, %v619_v35  ;;  %1145 = vmatprep.subr.bf16.mxu0 %v687_v4 }
 0x23e   : > { %v605_v37 = vpop.xlane.xlu1 %604  ;;  %1146 = vmatpush3.bf16.msra.mxu0 %v687_v4 }
 0x23f   : > { %1250 = vpow2.f32 %v628_v36  ;;  %v621_v38 = vsub.f32 %v588_v12, %v605_v37  ;;  %v1132_v12 = vpop.f32.mrb[6].mxu0 }
 0x240   : > { %v360_v13 = vpop.f32.mrb[7].mxu0  ;;  %v689_v16 = vpack.c.bf16 %v1132_v12, %v1131_v9 }
 0x241   : > { %v632_v39 = vmul.f32 1.442695, %v621_v38  ;;  %v1510_v40 = vpop.eup %1246  ;;  %v688_v15 = vpack.c.bf16 %v360_v13, %v357_v11 }
 0x242   : > { %v608_v41 = vpop.xlane.xlu1 %607  ;;  %v648_v42 = vsel %vm593_vm7, %v1510_v40, 0.0 }
 0x243   : > { %1252 = vpow2.f32 %v632_v39  ;;  %649 = vadd.xlane.f32.xlu1 %v648_v42  ;;  %v622_v47 = vsub.f32 %v589_v20, %v608_v41  ;;  %1147 = vmatprep.subr.bf16.mxu0 %v688_v15 }
 0x244   : > { %1148 = vmatpush3.bf16.msra.mxu0 %v688_v15 }
 0x245   : > { %v1514_v43 = vpop.eup %1248  ;;  %v634_v52 = vmul.f32 1.442695, %v622_v47  ;;  %1149 = vmatprep.subr.bf16.mxu0 %v689_v16 }
 0x246   : > { %v611_v44 = vpop.xlane.xlu1 %610  ;;  %v642_v45 = vsel %vm593_vm7, %v1514_v43, 0.0 }
 0x247   : > { %643 = vadd.xlane.f32.xlu1 %v642_v45  ;;  %v623_v53 = vsub.f32 %v590_v25, %v611_v44  ;;  %v1363_v44 = vmov 0.0|0.0   ;;  %v1365_v45 = vmov 0.0  }
 0x248   : > { %1150 = vmatpush3.bf16.msra.mxu0 %v689_v16  ;;  %1178 = vmatprep.subr.bf16.mxu1 %v1363_v44 }
 0x249   : > { %v1518_v46 = vpop.eup %1250  ;;  %v636_v59 = vmul.f32 1.442695, %v623_v53  ;;  %1175 = vmatprep.mubr.msk.f32.mxu1 %vm1364_vm2, %v1365_v45 }
 0x24a   : > { %v614_v48 = vpop.xlane.xlu1 %613  ;;  %v645_v49 = vsel %vm593_vm7, %v1518_v46, 0.0 }
 0x24b   : > { %v624_v50 = vsub.f32 %v591_v27, %v614_v48  ;;  %646 = vadd.xlane.f32.xlu1 %v645_v49 }
 0x24d   : > { %v1522_v51 = vpop.eup %1252  ;;  %v638_v54 = vmul.f32 1.442695, %v624_v50 }
 0x24e   : > { %v651_v57 = vsel %vm593_vm7, %v1522_v51, 0.0 }
 0x24f   : > { %1254 = vpow2.f32 %v638_v54  ;;  %652 = vadd.xlane.f32.xlu1 %v651_v57 }
 0x250   : > { %1256 = vpow2.f32 %v634_v52 }
 0x251   : > { %1258 = vpow2.f32 %v636_v59 }
 0x252   : > { %1260 = vpow2.f32 %v640_v60 }
 0x259   : > { %v1527_v61 = vpop.eup %1254 }
 0x25a   : > { %v660_v62 = vsel %vm593_vm7, %v1527_v61, 0.0  ;;  %v1257_v0 = vpop.eup %1256 }
 0x25b   : > { %661 = vadd.xlane.f32.xlu1 %v660_v62  ;;  %v654_v6 = vsel %vm593_vm7, %v1257_v0, 0.0  ;;  %v1259_v7 = vpop.eup %1258 }
 0x25c   : > { %v657_v8 = vsel %vm593_vm7, %v1259_v7, 0.0  ;;  %v1261_v10 = vpop.eup %1260 }
 0x25d   : > { %v663_v14 = vsel %vm593_vm7, %v1261_v10, 0.0 }
 0x25f   : > { %655 = vadd.xlane.f32.xlu1 %v654_v6 }
 0x263   : > { %658 = vadd.xlane.f32.xlu1 %v657_v8 }
 0x267   : > { %664 = vadd.xlane.f32.xlu1 %v663_v14 }
 0x2d0   : > { %v650_v17 = vpop.xlane.xlu1 %649 }
 0x2d4   : > { %v644_v18 = vpop.xlane.xlu1 %643 }
 0x2d5   : > { %1262 = vrcp.f32 %v644_v18 }
 0x2d8   : > { %v647_v20 = vpop.xlane.xlu1 %646 }
 0x2d9   : > { %1264 = vrcp.f32 %v647_v20 }
 0x2da   : > { %1266 = vrcp.f32 %v650_v17 }
 0x2dc   : > { %v653_v21 = vpop.xlane.xlu1 %652 }
 0x2dd   : > { %1268 = vrcp.f32 %v653_v21 }
 0x2df   : > { %v1263_v22 = vpop.eup %1262 }
 0x2e0   : > { %v674_v24 = vmul.f32 %v1263_v22, %v1514_v43 }
 0x2e3   : > { %v1265_v23 = vpop.eup %1264 }
 0x2e4   : > { %v675_v25 = vmul.f32 %v1265_v23, %v1518_v46  ;;  %v1267_v26 = vpop.eup %1266 }
 0x2e5   : > { %v676_v28 = vmul.f32 %v1267_v26, %v1510_v40 }
 0x2e6   : > { %v682_v19 = vpack.c.bf16 %v675_v25, %v674_v24 }
 0x2e7   : > { %v1269_v27 = vpop.eup %1268 }
 0x2e8   : > { %v662_v1 = vpop.xlane.xlu1 %661  ;;  %v677_v29 = vmul.f32 %v1269_v27, %v1522_v51  ;;  %1151 = vmatprep.mubr.msk.bf16.mxu0 %vm593_vm7, %v682_v19 }
 0x2ea   : > { %v683_v30 = vpack.c.bf16 %v677_v29, %v676_v28 }
 0x2ec   : > { %v656_v31 = vpop.xlane.xlu1 %655  ;;  %1152 = vmatmul.mubr.msk.bf16.vlgmr.msra.gmra.mrb[8].mxu0 %vm593_vm7, %v683_v30 }
 0x2ed   : > { %1270 = vrcp.f32 %v656_v31 }
 0x2f0   : > { %v659_v32 = vpop.xlane.xlu1 %658 }
 0x2f1   : > { %1272 = vrcp.f32 %v659_v32 }
 0x2f2   : > { %1274 = vrcp.f32 %v662_v1 }
 0x2f4   : > { %v665_v33 = vpop.xlane.xlu1 %664 }
 0x2f5   : > { %1276 = vrcp.f32 %v665_v33 }
 0x2f7   : > { %v1271_v34 = vpop.eup %1270 }
 0x2f8   : > { %v678_v36 = vmul.f32 %v1271_v34, %v1257_v0 }
 0x2fb   : > { %v1273_v35 = vpop.eup %1272 }
 0x2fc   : > { %v679_v37 = vmul.f32 %v1273_v35, %v1259_v7  ;;  %v1275_v38 = vpop.eup %1274  ;;  %v1366_v35 = vmov 0.03125  }
 0x2fd   : > { %v680_v41 = vmul.f32 %v1275_v38, %v1527_v61 }
 0x2fe   : > { %v684_v39 = vpack.c.bf16 %v679_v37, %v678_v36 }
 0x2ff   : > { %v1277_v40 = vpop.eup %1276 }
 0x300   : > { %1155 = vmatprep.mubr.msk.bf16.mxu0 %vm593_vm7, %v684_v39  ;;  %v681_v42 = vmul.f32 %v1277_v40, %v1261_v10 }
 0x302   : > { %v685_v43 = vpack.c.bf16 %v681_v42, %v680_v41 }
 0x304   : > { %1156 = vmatmul.mubr.msk.bf16.gmra.mrb[12].mxu0 %vm593_vm7, %v685_v43 }
 0x3bf   : > { %v1153_v46 = vpop.f32.mrb[8].mxu0 }
 0x3c0   : > { %v777_v47 = vmin.f32 %v1153_v46, 0.0  ;;  %v736_v48 = vpop.f32.mrb[9].mxu0  ;;  %vm769_vm4 = vcmp.gt.f32.partialorder %v1153_v46, 0.0 }
 0x3c1   : > { %v775_v49 = vmin.f32 %v736_v48, 0.0  ;;  %v1154_v50 = vpop.f32.mrb[10].mxu0  ;;  %vm767_vm5 = vcmp.gt.f32.partialorder %v736_v48, 0.0 }
 0x3c2   : > { %v787_v51 = vmul.f32 1.442695, %v777_v47  ;;  %v778_v52 = vmin.f32 %v1154_v50, 0.0  ;;  %v739_v53 = vpop.f32.mrb[11].mxu0  ;;  %vm770_vm6 = vcmp.gt.f32.partialorder %v1154_v50, 0.0 }
 0x3c3   : > { %v783_v54 = vmul.f32 1.442695, %v775_v49  ;;  %v776_v56 = vmin.f32 %v739_v53, 0.0  ;;  %vm768_vm7 = vcmp.gt.f32.partialorder %v739_v53, 0.0 }
 0x3c4   : > { %1278 = vpow2.f32 %v787_v51  ;;  %v789_v57 = vmul.f32 1.442695, %v778_v52 }
 0x3c5   : > { %1280 = vpow2.f32 %v783_v54  ;;  %v785_v58 = vmul.f32 1.442695, %v776_v56 }
 0x3c6   : > { %1282 = vpow2.f32 %v789_v57 }
 0x3c7   : > { %1284 = vpow2.f32 %v785_v58 }
 0x3ce   : > { %v1279_v59 = vpop.eup %1278 }
 0x3cf   : > { %v1281_v60 = vpop.eup %1280  ;;  %v1075_v61 = vadd.f32 -1.0, %v1279_v59 }
 0x3d0   : > { %v1283_v62 = vpop.eup %1282  ;;  %v1073_v63 = vadd.f32 -1.0, %v1281_v60 }
 0x3d1   : > { %v1285_v0 = vpop.eup %1284  ;;  %v809_v2 = vsel %vm769_vm4, %v1153_v46, %v1075_v61  ;;  %v1076_v3 = vadd.f32 -1.0, %v1283_v62 }
 0x3d2   : > { %818 = vst.msk [vmem:[%s1548_s26 + $0x10] sm:$0xff] %vm815_vm3, %v809_v2  ;;  %v807_v4 = vsel %vm767_vm5, %v736_v48, %v1073_v63  ;;  %v1074_v5 = vadd.f32 -1.0, %v1285_v0 }
 0x3d3   : > { %816 = vst.msk [vmem:[%s1548_s26] sm:$0xff] %vm815_vm3, %v807_v4  ;;  %v810_v6 = vsel %vm770_vm6, %v1154_v50, %v1076_v3 }
 0x3d4   : > { %819 = vst.msk [vmem:[%s1548_s26 + $0x18] sm:$0xff] %vm815_vm3, %v810_v6  ;;  %v1183_v55 = vpack.c.bf16 %v810_v6, %v809_v2  ;;  %v808_v7 = vsel %vm768_vm7, %v739_v53, %v1074_v5 }
 0x3d5   : > { %817 = vst.msk [vmem:[%s1548_s26 + $0x8] sm:$0xff] %vm815_vm3, %v808_v7  ;;  %v1179_v9 = vpack.c.bf16 %v808_v7, %v807_v4 }
 0x3d7   : > { %v1157_v10 = vpop.f32.mrb[12].mxu0  ;;  %1181 = vmatpush3.bf16.xpose.msk.msra.mxu1 %vm1558_vm8, %v1179_v9 }
 0x3d8   : > { %v781_v11 = vmin.f32 %v1157_v10, 0.0  ;;  %v752_v12 = vpop.f32.mrb[13].mxu0  ;;  %1182 = vmatprep.subr.bf16.mxu1 %v1363_v44  ;;  %vm773_vm9 = vcmp.gt.f32.partialorder %v1157_v10, 0.0 }
 0x3d9   : > { %v779_v13 = vmin.f32 %v752_v12, 0.0  ;;  %v1158_v14 = vpop.f32.mrb[14].mxu0  ;;  %vm771_vm10 = vcmp.gt.f32.partialorder %v752_v12, 0.0 }
 0x3da   : > { %v795_v15 = vmul.f32 1.442695, %v781_v11  ;;  %v782_v16 = vmin.f32 %v1158_v14, 0.0  ;;  %v755_v17 = vpop.f32.mrb[15].mxu0  ;;  %vm774_vm11 = vcmp.gt.f32.partialorder %v1158_v14, 0.0 }
 0x3db   : > { %v791_v18 = vmul.f32 1.442695, %v779_v13  ;;  %v780_v20 = vmin.f32 %v755_v17, 0.0  ;;  %vm772_vm12 = vcmp.gt.f32.partialorder %v755_v17, 0.0 }
 0x3dc   : > { %1286 = vpow2.f32 %v795_v15  ;;  %v797_v21 = vmul.f32 1.442695, %v782_v16 }
 0x3dd   : > { %1288 = vpow2.f32 %v791_v18  ;;  %v793_v22 = vmul.f32 1.442695, %v780_v20 }
 0x3de   : > { %1290 = vpow2.f32 %v797_v21 }
 0x3df   : > { %1292 = vpow2.f32 %v793_v22  ;;  %1185 = vmatpush3.bf16.xpose.msk.msra.mxu1 %vm1558_vm8, %v1183_v55 }
 0x3e0   : > { %1186 = vmatprep.subr.bf16.mxu1 %v1363_v44 }
 0x3e6   : > { %v1287_v23 = vpop.eup %1286 }
 0x3e7   : > { %v1289_v24 = vpop.eup %1288  ;;  %v1079_v25 = vadd.f32 -1.0, %v1287_v23 }
 0x3e8   : > { %v1291_v26 = vpop.eup %1290  ;;  %v1077_v19 = vadd.f32 -1.0, %v1289_v24 }
 0x3e9   : > { %v1293_v27 = vpop.eup %1292  ;;  %v813_v1 = vsel %vm773_vm9, %v1157_v10, %v1079_v25  ;;  %v1080_v28 = vadd.f32 -1.0, %v1291_v26 }
 0x3ea   : > { %822 = vst.msk [vmem:[%s1548_s26 + $0x30] sm:$0xff] %vm815_vm3, %v813_v1  ;;  %v811_v29 = vsel %vm771_vm10, %v752_v12, %v1077_v19  ;;  %v1078_v30 = vadd.f32 -1.0, %v1293_v27 }
 0x3eb   : > { %820 = vst.msk [vmem:[%s1548_s26 + $0x20] sm:$0xff] %vm815_vm3, %v811_v29  ;;  %v814_v31 = vsel %vm774_vm11, %v1158_v14, %v1080_v28 }
 0x3ec   : > { %823 = vst.msk [vmem:[%s1548_s26 + $0x38] sm:$0xff] %vm815_vm3, %v814_v31  ;;  %v1191_v32 = vpack.c.bf16 %v814_v31, %v813_v1  ;;  %v812_v33 = vsel %vm772_vm12, %v755_v17, %v1078_v30 }
 0x3ed   : > { %821 = vst.msk [vmem:[%s1548_s26 + $0x28] sm:$0xff] %vm815_vm3, %v812_v33  ;;  %v1187_v34 = vpack.c.bf16 %v812_v33, %v811_v29 }
 0x3ef   : > { %1189 = vmatpush3.bf16.xpose.msk.msra.mxu1 %vm1558_vm8, %v1187_v34 }
 0x3f0   : > { %1190 = vmatprep.subr.bf16.mxu1 %v1363_v44 }
 0x3f7   : > { %1193 = vmatpush3.bf16.xpose.msk.msra.mxu1 %vm1558_vm8, %v1191_v32 }
 0x3fe   : > { %1176 = vmatmul.mubr.msk.f32.vlgmr.msra.gmra.mrb[8].mxu1 %vm815_vm3, %v1366_v35 }
 0x4d1   : > { %v917_v36 = vpop.f32.mrb[8].mxu1 }
 0x4d2   : > { %v921_v37 = vand.u32 2147483647, %v917_v36  ;;  %v1177_v38 = vpop.f32.mrb[9].mxu1  ;;  %vm927_vm14 = vcmp.ge.f32.partialorder %v917_v36, 0.0 }
 0x4d4   : > { %v922_v39 = vsub.f32 0.0, %v921_v37 }
 0x4d6   : > { %v923_v40 = vmul.f32 1.442695, %v922_v39 }
 0x4d8   : > { %1294 = vpow2.f32 %v923_v40 }
 0x4e2   : > { %v1295_v41 = vpop.eup %1294 }
 0x4e3   : > { %v925_v42 = vadd.f32 1.0, %v1295_v41 }
 0x4e5   : > { %1296 = vrcp.f32 %v925_v42 }
 0x4ef   : > { %v1297_v43 = vpop.eup %1296 }
 0x4f0   : > { %v928_v44 = vmul.f32 %v1297_v43, %v1295_v41 }
 0x4f2   : > { %v929_v45 = vsel %vm927_vm14, %v1297_v43, %v928_v44 }
 0x4f3   : > { %931 = vst.msk [vmem:[%s239_s7] sm:$0x1] %vm930_vm13, %v929_v45 }
 0x4f4   : > { %1311 = shalt.err (!%p1308_p3)
}
 0x4f5   : > { %s1312_s16 = scalar_lea.hbm %s1589_s11, 16  ;;  %s1316_s25 = scalar_lea.hbm %s1636_s5, 32 }
 0x4f6   : > { %p1313_p4 = scmp.ne.s32.totalorder %s1589_s11, %s1312_s16  ;;  %p1317_p9 = scmp.lt.u32.totalorder %s1589_s11, %s1636_s5 }
 0x4f7   : > { %p1318_p10 = scmp.lt.u32.totalorder %s1316_s25, %s1312_s16  ;;  %p1320_p12 = scmp.lt.u32.totalorder %s1312_s16, %s1589_s11 }
 0x4f8   : > { %p1314_p7 = pnand %p1313_p4, %p1436_p5 }
 0x4f9   : > { %p1319_p11 = por %p1318_p10, %p1317_p9 }
 0x4fa   : > { %p1315_p8 = pneg %p1314_p7 }
 0x4fb   : > { %p1321_p13 = por %p1320_p12, %p1319_p11 }
 0x4fd   : > { %p1322_p0 = pnand %p1321_p13, %p1315_p8 }
 0x4ff   : > { %1325 = shalt.err (!%p1322_p0)
}
 0x500   : > { %1194 = dma.vmem_to_hbm [thread:$0]  (%p1436_p5), %s1591_s8, 16, %s1589_s11, %s938_s12  }
 0x501 PF: > { %p1200_p1 = scmp.ge.s32.totalorder %s1360_s21, 2  ;;  %s973_s6 = sand.u32 1, %s1348_s18  }
 0x502   : > { %s974_s7 = scalar_lea.sflag [#allocation3], %s973_s6 }
 0x503   : > { %p1197_p2 = pnand %p1200_p1, %p1440_p6 }
 0x505   : > { %1343 = dma.done.wait (!%p1197_p2), %s974_s7, 16  }
 0x506   : > { %1345 = vsyncadd (!%p1197_p2), %s974_s7, 4294967280  ;;  %p16_p3 = scmp.ge.s32.totalorder %s1423_s24, 4   ;;  %s1641_s18 = smov %s1352_s19 }
 0x507   : > { %s1642_s19 = smov %s1356_s20  ;;  %s1643_s20 = smov %s1434_s27 }
 0x508   : > { %s1644_s21 = smov %s1423_s24  ;;  %18 = sbr.rel (!%p16_p3) target bundleno = 3 (0x3), region = 86 }
 0x50f   :  { %978 = vsyncpa [#allocation3], 1 }
 0x510   :  { %980 = vsyncpa [#allocation3 + $0x1], 1 }

</bundles_post_ra>
